<compile_context>
chip_gen: v6e
topology: v6e:2x2x1
jax: 0.10.0
libtpu: 0.0.40
codegen_flags: <defaults>
</compile_context>

<pallas_src>
import math
import functools

import jax
import jax.numpy as jnp
from jax.experimental import pallas as pl
from jax.experimental.pallas import tpu as pltpu

_LANE = 128
_SUBLANE = 8


def _round_up(n, m):
    return ((n + m - 1) // m) * m


def _self_attention_kernel(x_ref, wqkv_ref, bqkv_ref, wo_ref, bo_ref, o_ref,
                           *, hp, seq_valid, seq_padded):
    bt, s, d = x_ref.shape
    cdt = x_ref.dtype  # compute dtype for MXU operands (bf16 path if bf16 in)

    # Pack all batch rows of this tile into one tall matmul: M = bt*s rows.
    x2d = x_ref[...].reshape(bt * s, d)                                  # (M, D)

    # Fused QKV projection: one MXU push over a 3*hp-wide weight, one bias add.
    # The 1/sqrt(H) scale is already folded into the Q columns by the wrapper.
    qkv = jnp.dot(x2d, wqkv_ref[...], preferred_element_type=jnp.float32)
    qkv = qkv + bqkv_ref[...]                                            # (M, 3hp)

    q = qkv[:, 0 * hp:1 * hp].reshape(bt, s, hp).astype(cdt)
    k = qkv[:, 1 * hp:2 * hp].reshape(bt, s, hp).astype(cdt)
    v = qkv[:, 2 * hp:3 * hp].reshape(bt, s, hp).astype(cdt)

    # Scores: contract the feature axis directly (no materialized k.T).
    attn = jnp.einsum("bqh,bkh->bqk", q, k,
                      preferred_element_type=jnp.float32)                # (bt,S,S)

    if seq_padded:
        # Mask padded key positions so they get ~0 softmax weight.
        kv_idx = jax.lax.broadcasted_iota(jnp.int32, attn.shape, 2)
        attn = jnp.where(kv_idx < seq_valid, attn, -1e9)

    # Numerically-stable softmax; reciprocal goes to the otherwise-idle EUP.
    m = jnp.max(attn, axis=-1, keepdims=True)
    e = jnp.exp(attn - m)
    denom = jnp.sum(e, axis=-1, keepdims=True)
    p = e * pl.reciprocal(denom, approx=True)

    # TODO(synk): for long sequences, tile the KV axis (online softmax) so the
    # f32 (bt,S,S) score tile stays bounded in VMEM.  Generation-aware
    # threshold: cap un-tiled S around ~1-1.5K at bt=1 on v7x (64 MiB VMEM),
    # ~2K on v5e/v6e; the extra KV grid axis also feeds the second v7x TC.
    score = jnp.einsum("bqk,bkh->bqh", p.astype(cdt), v,
                       preferred_element_type=jnp.float32)               # (bt,S,hp)

    out = jnp.dot(score.reshape(bt * s, hp).astype(cdt), wo_ref[...],
                  preferred_element_type=jnp.float32) + bo_ref[...]      # (M, D)
    o_ref[...] = out.reshape(bt, s, d).astype(o_ref.dtype)


def self_attention(x, params, num_hiddens, *, batch_tile=None, target_rows=512):
    """x: (B, S, D). params: dict of weights/biases (torch-Linear semantics,
    stored as [in, out]). Returns (B, S, D)."""
    B, S, D = x.shape
    H = num_hiddens
    hp = max(_round_up(H, _LANE), _LANE)       # lane-aligned hidden width
    Sp = _round_up(S, _SUBLANE)                # sublane-aligned sequence
    dt = x.dtype
    scale = 1.0 / math.sqrt(H)

    def pad2(a, r, c):
        return jnp.pad(a, ((0, r - a.shape[0]), (0, c - a.shape[1])))

    # Fused, lane-aligned weights.  Wrapper-side padding / scaling constant-
    # folds under jit; zero feature columns contribute 0 to QK^T and out-proj.
    wqkv = jnp.concatenate([pad2(params["wq"] * scale, D, hp),   # scale folded
                            pad2(params["wk"], D, hp),
                            pad2(params["wv"], D, hp)], axis=1).astype(dt)
    bqkv = jnp.concatenate([pad2(params["bq"] * scale, 1, hp),
                            pad2(params["bk"], 1, hp),
                            pad2(params["bv"], 1, hp)], axis=1).astype(dt)
    wo = pad2(params["wo"], hp, D).astype(dt)                    # (hp, D)
    bo = params["bo"].astype(dt)                                 # (1, D)

    # Batch tile: fill the MXU with ~target_rows rows per step, keep >=2
    # parallel grid steps (v7x has 2 TCs; one extra ~0.35us step is free on
    # 1-TC v5e/v6e), and pad B instead of shrinking bt for awkward B.
    if batch_tile is None:
        bt = min(B, max(1, -(-target_rows // Sp)))
        if B >= 2:
            bt = max(1, min(bt, B // 2))
    else:
        bt = batch_tile
    Bp = _round_up(B, bt)
    grid = (Bp // bt,)

    xp = x
    if Bp != B or Sp != S:
        xp = jnp.pad(x, ((0, Bp - B), (0, Sp - S), (0, 0)))

    # Advisory cost estimate for XLA scheduling around the custom call.
    rows = Bp * Sp
    itemsize = jnp.dtype(dt).itemsize
    flops = (2 * rows * D * 3 * hp         # fused QKV projection
             + 2 * Bp * Sp * Sp * hp       # Q @ K^T
             + 2 * Bp * Sp * Sp * hp       # P @ V
             + 2 * rows * hp * D)          # output projection
    transcendentals = Bp * Sp * Sp + Bp * Sp
    bytes_accessed = itemsize * (xp.size + wqkv.size + bqkv.size
                                 + wo.size + bo.size + rows * D)

    kernel = functools.partial(_self_attention_kernel, hp=hp,
                               seq_valid=S, seq_padded=(Sp != S))

    def make_call(single_buffer_weights):
        if single_buffer_weights:
            # Constant-index blocks: no need for double buffering.
            wspec = lambda shape: pl.BlockSpec(
                shape, lambda b: (0,) * len(shape),
                pipeline_mode=pl.Buffered(1))
        else:
            wspec = lambda shape: pl.BlockSpec(shape, lambda b: (0,) * len(shape))
        return pl.pallas_call(
            kernel,
            out_shape=jax.ShapeDtypeStruct((Bp, Sp, D), dt),
            grid_spec=pltpu.PrefetchScalarGridSpec(
                num_scalar_prefetch=0,
                grid=grid,
                in_specs=[
                    pl.BlockSpec((bt, Sp, D), lambda b: (b, 0, 0)),   # x tile
                    wspec((D, 3 * hp)),                                # fused Wqkv
                    wspec((1, 3 * hp)),                                # fused bqkv
                    wspec((hp, D)),                                    # Wo
                    wspec((1, D)),                                     # bo
                ],
                out_specs=pl.BlockSpec((bt, Sp, D), lambda b: (b, 0, 0)),
            ),
            compiler_params=pltpu.CompilerParams(
                dimension_semantics=("parallel",),
                vmem_limit_bytes=48 * 1024 * 1024,   # safe under v7x's 64 MiB
            ),
            cost_estimate=pl.CostEstimate(
                flops=flops,
                transcendentals=transcendentals,
                bytes_accessed=bytes_accessed,
            ),
        )

    try:
        out = make_call(True)(xp, wqkv, bqkv, wo, bo)
    except Exception:
        # Fallback for jax versions that reject single-buffered constant
        # blocks; only costs extra VMEM residency, never correctness.
        out = make_call(False)(xp, wqkv, bqkv, wo, bo)

    if Bp != B or Sp != S:
        out = out[:B, :S, :]
    return out


def init_params(key, input_dims, num_hiddens):
    """Deterministic synthetic init (uniform, like torch Linear default scale)."""
    keys = jax.random.split(key, 8)

    def lin(kw, kb, fan_in, fan_out):
        bound = 1.0 / math.sqrt(fan_in)
        w = jax.random.uniform(kw, (fan_in, fan_out), jnp.float32, -bound, bound)
        b = jax.random.uniform(kb, (1, fan_out), jnp.float32, -bound, bound)
        return w, b

    wq, bq = lin(keys[0], keys[1], input_dims, num_hiddens)
    wk, bk = lin(keys[2], keys[3], input_dims, num_hiddens)
    wv, bv = lin(keys[4], keys[5], input_dims, num_hiddens)
    wo, bo = lin(keys[6], keys[7], num_hiddens, input_dims)
    return dict(wq=wq, bq=bq, wk=wk, bk=bk, wv=wv, bv=bv, wo=wo, bo=bo)


def self_attention_ref(x, params, num_hiddens):
    """Pure-JAX reference mirroring the PyTorch forward."""
    q = x @ params["wq"] + params["bq"]
    k = x @ params["wk"] + params["bk"]
    v = x @ params["wv"] + params["bv"]
    attn = jnp.einsum("bsh,bth->bst", q, k) / math.sqrt(num_hiddens)
    attn = jax.nn.softmax(attn, axis=-1)
    output = attn @ v
    return output @ params["wo"] + params["bo"]


if __name__ == "__main__":
    B, S, D, H = 2, 8, 32, 32   # batch, seq, input_dims, num_hiddens

    key = jax.random.PRNGKey(0)
    k_x, k_p = jax.random.split(key)
    x = jax.random.normal(k_x, (B, S, D), dtype=jnp.float32)
    params = init_params(k_p, D, H)

    out = self_attention(x, params, H)
    out = jax.block_until_ready(out)

    ref = self_attention_ref(x, params, H)
    assert out.shape == (B, S, D)
    # approx=True reciprocal on the softmax denominator -> slightly looser
    # tolerance than exact-divide f32.
    assert jnp.allclose(out, ref, atol=2e-3, rtol=2e-3), "mismatch vs reference"

    print("KERNEL_OK")
</pallas_src>

<mosaic_0001>
module attributes {stable_mosaic.version = 11 : i64} {
  func.func @_self_attention_kernel(%arg0: i32, %arg1: memref<1x8x32xf32, #tpu.memory_space<vmem>>, %arg2: memref<32x384xf32, #tpu.memory_space<vmem>>, %arg3: memref<1x384xf32, #tpu.memory_space<vmem>>, %arg4: memref<128x32xf32, #tpu.memory_space<vmem>>, %arg5: memref<1x32xf32, #tpu.memory_space<vmem>>, %arg6: memref<1x8x32xf32, #tpu.memory_space<vmem>>) attributes {dimension_semantics = [#tpu.dimension_semantics<parallel>], iteration_bounds = array<i64: 2>, scalar_prefetch = 0 : i64, scratch_operands = 0 : i64, tpu.core_type = #tpu.core_type<tc>, window_params = [{transform_indices = @transform_0, window_bounds = array<i64: 1, 8, 32>}, {pipeline_mode = #tpu.pipeline_mode<synchronous>, transform_indices = @transform_1, window_bounds = array<i64: 32, 384>}, {pipeline_mode = #tpu.pipeline_mode<synchronous>, transform_indices = @transform_2, window_bounds = array<i64: 1, 384>}, {pipeline_mode = #tpu.pipeline_mode<synchronous>, transform_indices = @transform_3, window_bounds = array<i64: 128, 32>}, {pipeline_mode = #tpu.pipeline_mode<synchronous>, transform_indices = @transform_4, window_bounds = array<i64: 1, 32>}, {transform_indices = @transform_5, window_bounds = array<i64: 1, 8, 32>}]} {
    %c0 = arith.constant 0 : index
    %c0_0 = arith.constant 0 : index
    %c0_1 = arith.constant 0 : index
    %0 = vector.load %arg1[%c0, %c0_0, %c0_1] : memref<1x8x32xf32, #tpu.memory_space<vmem>>, vector<1x8x32xf32>
    %1 = vector.shape_cast %0 : vector<1x8x32xf32> to vector<8x32xf32>
    %c0_2 = arith.constant 0 : index
    %c0_3 = arith.constant 0 : index
    %2 = vector.load %arg2[%c0_2, %c0_3] : memref<32x384xf32, #tpu.memory_space<vmem>>, vector<32x384xf32>
    %cst = arith.constant dense<0.000000e+00> : vector<8x384xf32>
    %3 = tpu.matmul %1, %2, %cst {dimension_numbers = #tpu.dot_dimension_numbers<[1], [0], [0], [1], [0, 0, 1, 1], [], []>} : vector<8x32xf32>, vector<32x384xf32>, vector<8x384xf32> -> vector<8x384xf32>
    %c0_4 = arith.constant 0 : index
    %c0_5 = arith.constant 0 : index
    %4 = vector.load %arg3[%c0_4, %c0_5] : memref<1x384xf32, #tpu.memory_space<vmem>>, vector<1x384xf32>
    %5 = vector.broadcast %4 : vector<1x384xf32> to vector<8x384xf32>
    %6 = arith.addf %3, %5 : vector<8x384xf32>
    %7 = vector.extract_strided_slice %6 {offsets = [0, 0], sizes = [8, 128], strides = [1, 1]} : vector<8x384xf32> to vector<8x128xf32>
    %8 = vector.shape_cast %7 : vector<8x128xf32> to vector<1x8x128xf32>
    %9 = vector.extract_strided_slice %6 {offsets = [0, 128], sizes = [8, 128], strides = [1, 1]} : vector<8x384xf32> to vector<8x128xf32>
    %10 = vector.shape_cast %9 : vector<8x128xf32> to vector<1x8x128xf32>
    %11 = vector.extract_strided_slice %6 {offsets = [0, 256], sizes = [8, 128], strides = [1, 1]} : vector<8x384xf32> to vector<8x128xf32>
    %12 = vector.shape_cast %11 : vector<8x128xf32> to vector<1x8x128xf32>
    "tpu.trace_start"() <{level = 10 : i32, message = "bqh,bkh->bqk"}> : () -> ()
    %cst_6 = arith.constant dense<0.000000e+00> : vector<1x8x8xf32>
    %13 = tpu.matmul %8, %10, %cst_6 {dimension_numbers = #tpu.dot_dimension_numbers<[2], [2], [1], [1], [0, 0, 0, 1, 1, 1], [0], [0]>} : vector<1x8x128xf32>, vector<1x8x128xf32>, vector<1x8x8xf32> -> vector<1x8x8xf32>
    "tpu.trace_stop"() : () -> ()
    %cst_7 = arith.constant dense<0xFF800000> : vector<1x8xf32>
    %14 = vector.multi_reduction <maximumf>, %13, %cst_7 [2] : vector<1x8x8xf32> to vector<1x8xf32>
    %15 = vector.shape_cast %14 : vector<1x8xf32> to vector<1x8x1xf32>
    %16 = vector.broadcast %15 : vector<1x8x1xf32> to vector<1x8x8xf32>
    %17 = arith.subf %13, %16 : vector<1x8x8xf32>
    %18 = math.exp %17 : vector<1x8x8xf32>
    %cst_8 = arith.constant dense<0.000000e+00> : vector<1x8xf32>
    %19 = vector.multi_reduction <add>, %18, %cst_8 [2] : vector<1x8x8xf32> to vector<1x8xf32>
    %20 = vector.shape_cast %19 : vector<1x8xf32> to vector<1x8x1xf32>
    %21 = tpu.reciprocal %20 {approx = true} : vector<1x8x1xf32> -> vector<1x8x1xf32>
    %22 = vector.broadcast %21 : vector<1x8x1xf32> to vector<1x8x8xf32>
    %23 = arith.mulf %18, %22 : vector<1x8x8xf32>
    "tpu.trace_start"() <{level = 10 : i32, message = "bqk,bkh->bqh"}> : () -> ()
    %cst_9 = arith.constant dense<0.000000e+00> : vector<1x8x128xf32>
    %24 = tpu.matmul %23, %12, %cst_9 {dimension_numbers = #tpu.dot_dimension_numbers<[2], [1], [1], [2], [0, 0, 0, 1, 1, 2], [0], [0]>} : vector<1x8x8xf32>, vector<1x8x128xf32>, vector<1x8x128xf32> -> vector<1x8x128xf32>
    "tpu.trace_stop"() : () -> ()
    %25 = vector.shape_cast %24 : vector<1x8x128xf32> to vector<8x128xf32>
    %c0_10 = arith.constant 0 : index
    %c0_11 = arith.constant 0 : index
    %26 = vector.load %arg4[%c0_10, %c0_11] : memref<128x32xf32, #tpu.memory_space<vmem>>, vector<128x32xf32>
    %cst_12 = arith.constant dense<0.000000e+00> : vector<8x32xf32>
    %27 = tpu.matmul %25, %26, %cst_12 {dimension_numbers = #tpu.dot_dimension_numbers<[1], [0], [0], [1], [0, 0, 1, 1], [], []>} : vector<8x128xf32>, vector<128x32xf32>, vector<8x32xf32> -> vector<8x32xf32>
    %c0_13 = arith.constant 0 : index
    %c0_14 = arith.constant 0 : index
    %28 = vector.load %arg5[%c0_13, %c0_14] : memref<1x32xf32, #tpu.memory_space<vmem>>, vector<1x32xf32>
    %29 = vector.broadcast %28 : vector<1x32xf32> to vector<8x32xf32>
    %30 = arith.addf %27, %29 : vector<8x32xf32>
    %31 = vector.shape_cast %30 : vector<8x32xf32> to vector<1x8x32xf32>
    %c0_15 = arith.constant 0 : index
    %c0_16 = arith.constant 0 : index
    %c0_17 = arith.constant 0 : index
    %32 = vector.load %arg6[%c0_15, %c0_16, %c0_17] : memref<1x8x32xf32, #tpu.memory_space<vmem>>, vector<1x8x32xf32>
    tpu.vector_store %arg6[%c0_15, %c0_16, %c0_17], %31 {strides = array<i32>} : memref<1x8x32xf32, #tpu.memory_space<vmem>>, vector<1x8x32xf32>,
    return
  }
  func.func @transform_0(%arg0: i32) -> (i32, i32, i32) {
    %c0_i32 = arith.constant 0 : i32
    %c0_i32_0 = arith.constant 0 : i32
    %c0_i32_1 = arith.constant 0 : i32
    return %arg0, %c0_i32, %c0_i32_0 : i32, i32, i32
  }
  func.func @transform_1(%arg0: i32) -> (i32, i32) {
    %c0_i32 = arith.constant 0 : i32
    %c0_i32_0 = arith.constant 0 : i32
    %c0_i32_1 = arith.constant 0 : i32
    return %c0_i32, %c0_i32_0 : i32, i32
  }
  func.func @transform_2(%arg0: i32) -> (i32, i32) {
    %c0_i32 = arith.constant 0 : i32
    %c0_i32_0 = arith.constant 0 : i32
    %c0_i32_1 = arith.constant 0 : i32
    return %c0_i32, %c0_i32_0 : i32, i32
  }
  func.func @transform_3(%arg0: i32) -> (i32, i32) {
    %c0_i32 = arith.constant 0 : i32
    %c0_i32_0 = arith.constant 0 : i32
    %c0_i32_1 = arith.constant 0 : i32
    return %c0_i32, %c0_i32_0 : i32, i32
  }
  func.func @transform_4(%arg0: i32) -> (i32, i32) {
    %c0_i32 = arith.constant 0 : i32
    %c0_i32_0 = arith.constant 0 : i32
    %c0_i32_1 = arith.constant 0 : i32
    return %c0_i32, %c0_i32_0 : i32, i32
  }
  func.func @transform_5(%arg0: i32) -> (i32, i32, i32) {
    %c0_i32 = arith.constant 0 : i32
    %c0_i32_0 = arith.constant 0 : i32
    %c0_i32_1 = arith.constant 0 : i32
    return %arg0, %c0_i32, %c0_i32_0 : i32, i32, i32
  }
}

module attributes {stable_mosaic.version = 11 : i64} {
  func.func @_self_attention_kernel(%arg0: i32, %arg1: memref<1x8x32xf32, #tpu.memory_space<vmem>>, %arg2: memref<32x384xf32, #tpu.memory_space<vmem>>, %arg3: memref<1x384xf32, #tpu.memory_space<vmem>>, %arg4: memref<128x32xf32, #tpu.memory_space<vmem>>, %arg5: memref<1x32xf32, #tpu.memory_space<vmem>>, %arg6: memref<1x8x32xf32, #tpu.memory_space<vmem>>) attributes {dimension_semantics = [#tpu.dimension_semantics<parallel>], iteration_bounds = array<i64: 2>, scalar_prefetch = 0 : i64, scratch_operands = 0 : i64, tpu.core_type = #tpu.core_type<tc>, window_params = [{transform_indices = @transform_0, window_bounds = array<i64: 1, 8, 32>}, {pipeline_mode = #tpu.pipeline_mode<synchronous>, transform_indices = @transform_1, window_bounds = array<i64: 32, 384>}, {pipeline_mode = #tpu.pipeline_mode<synchronous>, transform_indices = @transform_2, window_bounds = array<i64: 1, 384>}, {pipeline_mode = #tpu.pipeline_mode<synchronous>, transform_indices = @transform_3, window_bounds = array<i64: 128, 32>}, {pipeline_mode = #tpu.pipeline_mode<synchronous>, transform_indices = @transform_4, window_bounds = array<i64: 1, 32>}, {transform_indices = @transform_5, window_bounds = array<i64: 1, 8, 32>}]} {
    %c0 = arith.constant 0 : index
    %c0_0 = arith.constant 0 : index
    %c0_1 = arith.constant 0 : index
    %0 = vector.load %arg1[%c0, %c0_0, %c0_1] : memref<1x8x32xf32, #tpu.memory_space<vmem>>, vector<1x8x32xf32>
    %1 = vector.shape_cast %0 : vector<1x8x32xf32> to vector<8x32xf32>
    %c0_2 = arith.constant 0 : index
    %c0_3 = arith.constant 0 : index
    %2 = vector.load %arg2[%c0_2, %c0_3] : memref<32x384xf32, #tpu.memory_space<vmem>>, vector<32x384xf32>
    %cst = arith.constant dense<0.000000e+00> : vector<8x384xf32>
    %3 = tpu.matmul %1, %2, %cst {dimension_numbers = #tpu.dot_dimension_numbers<[1], [0], [0], [1], [0, 0, 1, 1], [], []>} : vector<8x32xf32>, vector<32x384xf32>, vector<8x384xf32> -> vector<8x384xf32>
    %c0_4 = arith.constant 0 : index
    %c0_5 = arith.constant 0 : index
    %4 = vector.load %arg3[%c0_4, %c0_5] : memref<1x384xf32, #tpu.memory_space<vmem>>, vector<1x384xf32>
    %5 = vector.broadcast %4 : vector<1x384xf32> to vector<8x384xf32>
    %6 = arith.addf %3, %5 : vector<8x384xf32>
    %7 = vector.extract_strided_slice %6 {offsets = [0, 0], sizes = [8, 128], strides = [1, 1]} : vector<8x384xf32> to vector<8x128xf32>
    %8 = vector.shape_cast %7 : vector<8x128xf32> to vector<1x8x128xf32>
    %9 = vector.extract_strided_slice %6 {offsets = [0, 128], sizes = [8, 128], strides = [1, 1]} : vector<8x384xf32> to vector<8x128xf32>
    %10 = vector.shape_cast %9 : vector<8x128xf32> to vector<1x8x128xf32>
    %11 = vector.extract_strided_slice %6 {offsets = [0, 256], sizes = [8, 128], strides = [1, 1]} : vector<8x384xf32> to vector<8x128xf32>
    %12 = vector.shape_cast %11 : vector<8x128xf32> to vector<1x8x128xf32>
    "tpu.trace_start"() <{level = 10 : i32, message = "bqh,bkh->bqk"}> : () -> ()
    %cst_6 = arith.constant dense<0.000000e+00> : vector<1x8x8xf32>
    %13 = tpu.matmul %8, %10, %cst_6 {dimension_numbers = #tpu.dot_dimension_numbers<[2], [2], [1], [1], [0, 0, 0, 1, 1, 1], [0], [0]>} : vector<1x8x128xf32>, vector<1x8x128xf32>, vector<1x8x8xf32> -> vector<1x8x8xf32>
    "tpu.trace_stop"() : () -> ()
    %cst_7 = arith.constant dense<0xFF800000> : vector<1x8xf32>
    %14 = vector.multi_reduction <maximumf>, %13, %cst_7 [2] : vector<1x8x8xf32> to vector<1x8xf32>
    %15 = vector.shape_cast %14 : vector<1x8xf32> to vector<1x8x1xf32>
    %16 = vector.broadcast %15 : vector<1x8x1xf32> to vector<1x8x8xf32>
    %17 = arith.subf %13, %16 : vector<1x8x8xf32>
    %18 = math.exp %17 : vector<1x8x8xf32>
    %cst_8 = arith.constant dense<0.000000e+00> : vector<1x8xf32>
    %19 = vector.multi_reduction <add>, %18, %cst_8 [2] : vector<1x8x8xf32> to vector<1x8xf32>
    %20 = vector.shape_cast %19 : vector<1x8xf32> to vector<1x8x1xf32>
    %21 = tpu.reciprocal %20 {approx = true} : vector<1x8x1xf32> -> vector<1x8x1xf32>
    %22 = vector.broadcast %21 : vector<1x8x1xf32> to vector<1x8x8xf32>
    %23 = arith.mulf %18, %22 : vector<1x8x8xf32>
    "tpu.trace_start"() <{level = 10 : i32, message = "bqk,bkh->bqh"}> : () -> ()
    %cst_9 = arith.constant dense<0.000000e+00> : vector<1x8x128xf32>
    %24 = tpu.matmul %23, %12, %cst_9 {dimension_numbers = #tpu.dot_dimension_numbers<[2], [1], [1], [2], [0, 0, 0, 1, 1, 2], [0], [0]>} : vector<1x8x8xf32>, vector<1x8x128xf32>, vector<1x8x128xf32> -> vector<1x8x128xf32>
    "tpu.trace_stop"() : () -> ()
    %25 = vector.shape_cast %24 : vector<1x8x128xf32> to vector<8x128xf32>
    %c0_10 = arith.constant 0 : index
    %c0_11 = arith.constant 0 : index
    %26 = vector.load %arg4[%c0_10, %c0_11] : memref<128x32xf32, #tpu.memory_space<vmem>>, vector<128x32xf32>
    %cst_12 = arith.constant dense<0.000000e+00> : vector<8x32xf32>
    %27 = tpu.matmul %25, %26, %cst_12 {dimension_numbers = #tpu.dot_dimension_numbers<[1], [0], [0], [1], [0, 0, 1, 1], [], []>} : vector<8x128xf32>, vector<128x32xf32>, vector<8x32xf32> -> vector<8x32xf32>
    %c0_13 = arith.constant 0 : index
    %c0_14 = arith.constant 0 : index
    %28 = vector.load %arg5[%c0_13, %c0_14] : memref<1x32xf32, #tpu.memory_space<vmem>>, vector<1x32xf32>
    %29 = vector.broadcast %28 : vector<1x32xf32> to vector<8x32xf32>
    %30 = arith.addf %27, %29 : vector<8x32xf32>
    %31 = vector.shape_cast %30 : vector<8x32xf32> to vector<1x8x32xf32>
    %c0_15 = arith.constant 0 : index
    %c0_16 = arith.constant 0 : index
    %c0_17 = arith.constant 0 : index
    %32 = vector.load %arg6[%c0_15, %c0_16, %c0_17] : memref<1x8x32xf32, #tpu.memory_space<vmem>>, vector<1x8x32xf32>
    tpu.vector_store %arg6[%c0_15, %c0_16, %c0_17], %31 {strides = array<i32>} : memref<1x8x32xf32, #tpu.memory_space<vmem>>, vector<1x8x32xf32>,
    return
  }
  func.func @transform_0(%arg0: i32) -> (i32, i32, i32) {
    %c0_i32 = arith.constant 0 : i32
    %c0_i32_0 = arith.constant 0 : i32
    %c0_i32_1 = arith.constant 0 : i32
    return %arg0, %c0_i32, %c0_i32_0 : i32, i32, i32
  }
  func.func @transform_1(%arg0: i32) -> (i32, i32) {
    %c0_i32 = arith.constant 0 : i32
    %c0_i32_0 = arith.constant 0 : i32
    %c0_i32_1 = arith.constant 0 : i32
    return %c0_i32, %c0_i32_0 : i32, i32
  }
  func.func @transform_2(%arg0: i32) -> (i32, i32) {
    %c0_i32 = arith.constant 0 : i32
    %c0_i32_0 = arith.constant 0 : i32
    %c0_i32_1 = arith.constant 0 : i32
    return %c0_i32, %c0_i32_0 : i32, i32
  }
  func.func @transform_3(%arg0: i32) -> (i32, i32) {
    %c0_i32 = arith.constant 0 : i32
    %c0_i32_0 = arith.constant 0 : i32
    %c0_i32_1 = arith.constant 0 : i32
    return %c0_i32, %c0_i32_0 : i32, i32
  }
  func.func @transform_4(%arg0: i32) -> (i32, i32) {
    %c0_i32 = arith.constant 0 : i32
    %c0_i32_0 = arith.constant 0 : i32
    %c0_i32_1 = arith.constant 0 : i32
    return %c0_i32, %c0_i32_0 : i32, i32
  }
  func.func @transform_5(%arg0: i32) -> (i32, i32, i32) {
    %c0_i32 = arith.constant 0 : i32
    %c0_i32_0 = arith.constant 0 : i32
    %c0_i32_1 = arith.constant 0 : i32
    return %arg0, %c0_i32, %c0_i32_0 : i32, i32, i32
  }
}

</mosaic_0001>

<bundles_post_ra>
// kernel: tpu_custom_call.1
= control target key start
LH: loop header
LB: loop body
LE: loop exit
PB: predicated region body
PF: predicated region fallthrough
CT: control target
= control target key end

     0   :  { %10 = vsyncpa [#allocation3], 0  ;;  %s1173_s0 = inlined_call_operand.vmem [shape: f32[2,8,32], index: 0, kind: input, shape index: {}]   ;;  %s1174_s1 = inlined_call_operand.vmem [shape: f32[32,384], index: 1, kind: input, shape index: {}]   ;;  %s1175_s2 = inlined_call_operand.vmem [shape: f32[1,384], index: 2, kind: input, shape index: {}]   ;;  %s1176_s3 = inlined_call_operand.vmem [shape: f32[128,32], index: 3, kind: input, shape index: {}]   ;;  %s1177_s4 = inlined_call_operand.vmem [shape: f32[1,32], index: 4, kind: input, shape index: {}]   ;;  %s1178_s5 = inlined_call_operand.hbm [shape: f32[2,8,32], index: 5, kind: output, shape index: {}]  }
   0x1   :  { %12 = vsyncpa [#allocation3 + $0x1], 0  ;;  %s953_s18 = smov 0   ;;  %s955_s19 = smov 0  }
   0x2   :  { %s957_s20 = smov 0   ;;  %s959_s21 = smov 0  }
   0x3 LB: > { %s974_s22 = sadd.s32 4294967295, %s918_s21   ;;  %s717_s23 = sadd.s32 4294967294, %s918_s21   ;;  %s918_s21 = sphi %s959_s21, %s1184_s21   ;;  %s914_s20 = sphi %s957_s20, %s1183_s20   ;;  %s910_s19 = sphi %s955_s19, %s1182_s19   ;;  %s906_s18 = sphi %s953_s18, %s1181_s18  }
   0x4   : > { %s978_s24 = sadd.s32 1, %s918_s21   ;;  %s135_s25 = sadd.s32 1, %s914_s20 }
   0x5   : > { %s132_s26 = ssub.s32 %s918_s21, %s978_s24  ;;  %p145_p0 = scmp.ne.s32.totalorder %s914_s20, %s910_s19 }
   0x6   : > { %p133_p1 = scmp.eq.s32.totalorder %s132_s26, 0  ;;  %p146_p2 = scmp.eq.s32.totalorder %s974_s22, 1 }
   0x7   : > { %p151_p3 = scmp.ne.s32.totalorder %s910_s19, %s906_s18  ;;  %p152_p4 = scmp.eq.s32.totalorder %s717_s23, 1 }
   0x8   : > { %s989_s27 = scalar_select %p133_p1, %s914_s20, %s135_s25  }
   0x9   : > { %p991_p5 = por %p146_p2, %p145_p0  ;;  %p995_p6 = por %p152_p4, %p151_p3 }
   0xa   : > { %p720_p7 = scmp.ge.s32.totalorder %s918_s21, 1  ;;  %p189_p8 = scmp.lt.s32.totalorder %s918_s21, 3 }
   0xc   : > { %p190_p9 = pnand %p720_p7, %p189_p8 }
   0xd   : > { %p216_p10 = scmp.lt.s32.totalorder (!%p190_p9), %s974_s22, 1  ;;  %s728_s8 = sshll.u32 (!%p190_p9), %s974_s22, 7 }
   0xe   : > { %193 = sbr.rel (%p190_p9) target bundleno = 1134 (0x46e), region = 40  ;;  %s1137_s13 = scalar_lea.hbm (!%p190_p9), %s1178_s5, %s728_s8 }
  0x13   : > { %v231_v0 = vld [vmem:[%s1174_s1 + $0x50] sm:$0xff]  ;;  %v230_v1 = vld [vmem:[%s1174_s1 + $0x48] sm:$0xff]  ;;  %v228_v2 = vld [vmem:[%s1174_s1 + $0x38] sm:$0xff]  ;;  %v920_v4 = vmov 0.0   ;;  %s217_s15 = scalar_select %p216_p10, %s974_s22, 1  ;;  %vm250_vm0 = vcmask 261120   ;;  %v235_v14 = vlaneseq }
  0x14   : > { %278 = vmatprep.subr.mxu1 %v231_v0  ;;  %v227_v3 = vld [vmem:[%s1174_s1 + $0x30] sm:$0xff]  ;;  %318 = vmatprep.mubr.f32.mxu1 %v920_v4  ;;  %v225_v5 = vld [vmem:[%s1174_s1 + $0x20] sm:$0xff]  ;;  %v224_v6 = vld [vmem:[%s1174_s1 + $0x18] sm:$0xff]  ;;  %vm921_vm1 = vmmov 0   ;;  %vm465_vm2 = vcmask 64512   ;;  %s922_s22 = smov [#allocation2]  }
  0x15   : > { %279 = vmatpush1.msra.mxu1 %v230_v1  ;;  %778 = vmatprep.subr.mxu0 %v920_v4  ;;  %v222_v7 = vld [vmem:[%s1174_s1 + $0x8] sm:$0xff]  ;;  %s722_s26 = sshll.u32 %s217_s15, 3  ;;  %v221_v8 = vld [vmem:[%s1174_s1] sm:$0xff]  ;;  %v232_v10 = vld [vmem:[%s1174_s1 + $0x58] sm:$0xff]  ;;  %v236_v15 = vshrl.u32 %v235_v14, 7  ;;  %s862_s16 = sshll.u32 %s922_s22, 4  ;;  %s863_s16 = int_to_ptr.vmem [resolvable:$false] %s862_s16 }
  0x16   : > { %280 = vmatprep.subr.mxu1 %v228_v2  ;;  %s219_s9 = scalar_lea.vmem %s1173_s0, %s722_s26  ;;  %v229_v11 = vld [vmem:[%s1174_s1 + $0x40] sm:$0xff]  ;;  %v226_v12 = vld [vmem:[%s1174_s1 + $0x28] sm:$0xff]  ;;  %v223_v13 = vld [vmem:[%s1174_s1 + $0x10] sm:$0xff]  ;;  %810 = vmatprep.mubr.msk.f32.mxu0 %vm921_vm1, %v920_v4  ;;  %s213_s26 = sand.u32 1, %s910_s19  }
  0x17   : > { %281 = vmatpush1.msra.mxu1 %v227_v3  ;;  %v220_v9 = vld [vmem:[%s219_s9] sm:$0xff]  ;;  %v245_v16 = vsub.s32 2, %v236_v15  ;;  %v241_v19 = vsub.s32 1, %v236_v15  ;;  %v237_v20 = vsub.s32 0, %v236_v15  ;;  %v565_v38 = vld [vmem:[%s1176_s3 + $0x78] sm:$0xff]  ;;  %v564_v39 = vld [vmem:[%s1176_s3 + $0x70] sm:$0xff] }
  0x18   : > { %282 = vmatprep.subr.mxu1 %v225_v5  ;;  %v233_v17 = vld [vmem:[%s1175_s2] sm:$0x7]  ;;  %779 = vmatpush3.msra.mxu0 %v565_v38  ;;  %v563_v40 = vld [vmem:[%s1176_s3 + $0x68] sm:$0xff]  ;;  %v561_v42 = vld [vmem:[%s1176_s3 + $0x58] sm:$0xff]  ;;  %s721_s30 = sshll.u32 %s213_s26, 3  ;;  %s645_s14 = scalar_lea.sflag [#allocation3], %s213_s26 }
  0x19   : > { %283 = vmatpush1.msra.mxu1 %v224_v6  ;;  %v246_v18 = vrot.slane %v233_v17, %v245_v16  ;;  %v242_v21 = vrot.slane %v233_v17, %v241_v19  ;;  %v238_v23 = vrot.slane %v233_v17, %v237_v20  ;;  %780 = vmatprep.subr.mxu0 %v920_v4  ;;  %v562_v41 = vld [vmem:[%s1176_s3 + $0x60] sm:$0xff]  ;;  %v560_v43 = vld [vmem:[%s1176_s3 + $0x50] sm:$0xff]  ;;  %v559_v44 = vld [vmem:[%s1176_s3 + $0x48] sm:$0xff]  ;;  %s215_s9 = scalar_lea.vmem [#allocation2], %s721_s30  ;;  %s864_s17 = scalar_lea.vmem %s863_s16, 256 }
  0x1a   : > { %284 = vmatprep.subr.mxu1 %v222_v7  ;;  %781 = vmatpush3.msra.mxu0 %v564_v39  ;;  %v558_v45 = vld [vmem:[%s1176_s3 + $0x40] sm:$0xff]  ;;  %v557_v46 = vld [vmem:[%s1176_s3 + $0x38] sm:$0xff]  ;;  %v556_v47 = vld [vmem:[%s1176_s3 + $0x30] sm:$0xff]  ;;  %s658_s10 = sshll.u32 %s215_s9, 4  ;;  %s659_s10 = int_to_ptr.vmem [resolvable:$true] %s658_s10 }
  0x1b   : > { %285 = vmatpush1.msra.mxu1 %v221_v8  ;;  %782 = vmatprep.subr.mxu0 %v920_v4  ;;  %v555_v48 = vld [vmem:[%s1176_s3 + $0x28] sm:$0xff]  ;;  %v554_v49 = vld [vmem:[%s1176_s3 + $0x20] sm:$0xff]  ;;  %v553_v50 = vld [vmem:[%s1176_s3 + $0x18] sm:$0xff]  ;;  %s858_s15 = scalar_lea.vmem %s659_s10, 128  ;;  %p865_p0 = scmp.lt.s32.totalorder %s659_s10, %s863_s16 }
  0x1c   : > { %723 = vmatmul.mubr.msk.f32.vlgmr.msra.gmra.mxu1 %vm250_vm0, %v220_v9  ;;  %757 = vmatprep.subr.mxu1 %v920_v4  ;;  %v552_v51 = vld [vmem:[%s1176_s3 + $0x10] sm:$0xff]  ;;  %v551_v52 = vld [vmem:[%s1176_s3 + $0x8] sm:$0xff]  ;;  %v550_v56 = vld [vmem:[%s1176_s3] sm:$0xff]  ;;  %p859_p11 = scmp.ne.s32.totalorder %s659_s10, %s858_s15  ;;  %p866_p1 = scmp.lt.s32.totalorder %s864_s17, %s858_s15 }
  0x1d   : > { %758 = vmatpush3.msra.mxu1 %v232_v10  ;;  %765 = vmatprep.mubr.msk.f32.mxu1 %vm921_vm1, %v920_v4  ;;  %v726_v59 = vld [vmem:[%s1177_s4] ss:$0 sm:$0xff] }
  0x1e   : > { %759 = vmatprep.subr.mxu1 %v920_v4  ;;  %783 = vmatpush3.msra.mxu0 %v563_v40  ;;  %p860_p12 = pnand %p859_p11, %p991_p5  ;;  %p867_p2 = por %p866_p1, %p865_p0 }
  0x1f   : > { %760 = vmatpush3.msra.mxu1 %v229_v11  ;;  %784 = vmatprep.subr.mxu0 %v920_v4 }
  0x20   : > { %761 = vmatprep.subr.mxu1 %v920_v4  ;;  %785 = vmatpush3.msra.mxu0 %v562_v41  ;;  %p861_p13 = pneg %p860_p12 }
  0x21   : > { %762 = vmatpush3.msra.mxu1 %v226_v12  ;;  %786 = vmatprep.subr.mxu0 %v920_v4 }
  0x22   : > { %763 = vmatprep.subr.mxu1 %v920_v4  ;;  %787 = vmatpush3.msra.mxu0 %v561_v42  ;;  %p868_p3 = pnand %p867_p2, %p861_p13 }
  0x23   : > { %764 = vmatpush3.msra.mxu1 %v223_v13  ;;  %788 = vmatprep.subr.mxu0 %v920_v4 }
  0x24   : > { %766 = vmatmul.mubr.msk.f32.vlgmr.msra.gmra.mxu1 %vm250_vm0, %v220_v9  ;;  %768 = vmatprep.subr.mxu1 %v920_v4 }
  0x25   : > { %770 = vmatprep.mubr.msk.f32.mxu1 %vm921_vm1, %v920_v4  ;;  %789 = vmatpush3.msra.mxu0 %v560_v43 }
  0x26   : > { %790 = vmatprep.subr.mxu0 %v920_v4 }
  0x27   : > { %791 = vmatpush3.msra.mxu0 %v559_v44 }
  0x28   : > { %792 = vmatprep.subr.mxu0 %v920_v4 }
  0x29   : > { %793 = vmatpush3.msra.mxu0 %v558_v45 }
  0x2a   : > { %794 = vmatprep.subr.mxu0 %v920_v4 }
  0x2b   : > { %795 = vmatpush3.msra.mxu0 %v557_v46 }
  0x2c   : > { %796 = vmatprep.subr.mxu0 %v920_v4 }
  0x2d   : > { %797 = vmatpush3.msra.mxu0 %v556_v47 }
  0x2e   : > { %798 = vmatprep.subr.mxu0 %v920_v4 }
  0x2f   : > { %799 = vmatpush3.msra.mxu0 %v555_v48 }
  0x30   : > { %800 = vmatprep.subr.mxu0 %v920_v4 }
  0x31   : > { %801 = vmatpush3.msra.mxu0 %v554_v49 }
  0x32   : > { %802 = vmatprep.subr.mxu0 %v920_v4 }
  0x33   : > { %803 = vmatpush3.msra.mxu0 %v553_v50 }
  0x34   : > { %804 = vmatprep.subr.mxu0 %v920_v4 }
  0x35   : > { %805 = vmatpush3.msra.mxu0 %v552_v51 }
  0x36   : > { %806 = vmatprep.subr.mxu0 %v920_v4 }
  0x37   : > { %807 = vmatpush3.msra.mxu0 %v551_v52 }
  0x38   : > { %808 = vmatprep.subr.mxu0 %v920_v4 }
  0x39   : > { %809 = vmatpush3.msra.mxu0 %v550_v56 }
  0xdc   : > { %v320_v22 = vpop.f32.mrf.mxu1 }
  0xdd   : > { %v321_v26 = vadd.f32 %v320_v22, %v238_v23 }
  0xde   : > { %v322_v24 = vpop.f32.mrf.mxu1 }
  0xdf   : > { %v323_v25 = vadd.f32 %v322_v24, %v242_v21 }
  0xe1   : > { %769 = vmatpush3.xpose.msra.mxu1 %v323_v25 }
  0xe2   : > { %773 = vmatprep.subr.mxu1 %v920_v4 }
  0xe4   : > { %771 = vmatmul.mubr.f32.vlgmr.msra.gmra.mxu1 %v321_v26  ;;  %v391_v27 = vpop.f32.mrf.mxu1 }
  0xe5   : > { %775 = vmatprep.mubr.msk.f32.mxu1 %vm921_vm1, %v920_v4  ;;  %v392_v28 = vadd.f32 %v391_v27, %v246_v18 }
  0xe6   : > { %v767_v29 = vpop.f32.mrf.mxu1 }
  0xe7   : > { %774 = vmatpush3.msra.mxu1 %v392_v28 }
 0x1a4   : > { %v461_v30 = vpop.f32.mrf.mxu1 }
 0x1a5   : > { %v466_v31 = vsel %vm465_vm2, %v461_v30, -inf }
 0x1a6   : > { %467 = vmax.xlane.f32.xlu0 %v466_v31  ;;  %v772_v32 = vpop.f32.mrf.mxu1 }
 0x22f   : > { %v468_v33 = vpop.xlane.xlu0 %467 }
 0x230   : > { %v469_v34 = vsub.f32 %v461_v30, %v468_v33 }
 0x232   : > { %v470_v35 = vmul.f32 1.442695, %v469_v34 }
 0x234   : > { %854 = vpow2.f32 %v470_v35 }
 0x241   : > { %v855_v36 = vpop.eup %854 }
 0x242   : > { %v472_v37 = vsel %vm465_vm2, %v855_v36, 0.0 }
 0x243   : > { %473 = vadd.xlane.f32.xlu0 %v472_v37 }
 0x2cc   : > { %v474_v53 = vpop.xlane.xlu0 %473 }
 0x2cd   : > { %856 = vrcp.f32 %v474_v53 }
 0x2da   : > { %v857_v54 = vpop.eup %856 }
 0x2db   : > { %v476_v55 = vmul.f32 %v857_v54, %v855_v36 }
 0x2dd   : > { %776 = vmatmul.mubr.msk.f32.vlgmr.msra.gmra.mxu1 %vm465_vm2, %v476_v55 }
 0x39d   : > { %v546_v57 = vpop.f32.mrf.mxu1 }
 0x39e   : > { %811 = vmatmul.mubr.f32.vlgmr.msra.gmra.mxu0 %v546_v57 }
 0x39f   : > { %v777_v58 = vpop.f32.mrf.mxu1 }
 0x45e   : > { %v639_v60 = vpop.f32.mrf.mxu0 }
 0x45f   : > { %v640_v61 = vadd.f32 %v726_v59, %v639_v60 }
 0x460   : > { %v812_v62 = vpop.f32.mrf.mxu0 }
 0x461   : > { %643 = vst.msk [vmem:[%s215_s9] sm:$0xff] %vm250_vm0, %v640_v61 }
 0x462   : > { %871 = shalt.err (!%p868_p3)
}
 0x463   : > { %s872_s23 = scalar_lea.hbm %s1137_s13, 128  ;;  %s876_s30 = scalar_lea.hbm %s1178_s5, 256 }
 0x464   : > { %p873_p4 = scmp.ne.s32.totalorder %s1137_s13, %s872_s23  ;;  %p877_p9 = scmp.lt.s32.totalorder %s1137_s13, %s1178_s5 }
 0x465   : > { %p878_p10 = scmp.lt.s32.totalorder %s876_s30, %s872_s23 }
 0x466   : > { %p874_p7 = pnand %p873_p4, %p991_p5 }
 0x467   : > { %p879_p11 = por %p878_p10, %p877_p9 }
 0x468   : > { %p875_p8 = pneg %p874_p7 }
 0x46a   : > { %p880_p12 = pnand %p879_p11, %p875_p8 }
 0x46c   : > { %883 = shalt.err (!%p880_p12)
}
 0x46d   : > { %813 = dma.vmem_to_hbm [thread:$0]  (%p991_p5), %s659_s10, 128, %s1137_s13, %s645_s14  }
 0x46e PF: > { %p819_p13 = scmp.ge.s32.totalorder %s918_s21, 2  ;;  %s670_s8 = sand.u32 1, %s906_s18  }
 0x46f   : > { %s671_s9 = scalar_lea.sflag [#allocation3], %s670_s8 }
 0x470   : > { %p816_p0 = pnand %p819_p13, %p995_p6 }
 0x472   : > { %p817_p1 = pneg %p816_p0 }
 0x474   : > { %901 = dma.done.wait (%p817_p1), %s671_s9, 128  }
 0x475   : > { %903 = vsyncadd (%p817_p1), %s671_s9, 4294967168  ;;  %p15_p2 = scmp.ge.s32.totalorder %s978_s24, 4   ;;  %s1181_s18 = smov %s910_s19 }
 0x476   : > { %s1182_s19 = smov %s914_s20  ;;  %s1183_s20 = smov %s989_s27 }
 0x477   : > { %s1184_s21 = smov %s978_s24  ;;  %17 = sbr.rel (!%p15_p2) target bundleno = 3 (0x3), region = 75 }
 0x47c   :  { %676 = vsyncpa [#allocation3], 1 }
 0x47d   :  { %678 = vsyncpa [#allocation3 + $0x1], 1 }

// kernel: tpu_custom_call.1
= control target key start
LH: loop header
LB: loop body
LE: loop exit
PB: predicated region body
PF: predicated region fallthrough
CT: control target
= control target key end

     0   :  { %10 = vsyncpa [#allocation3], 0  ;;  %s1173_s0 = inlined_call_operand.vmem [shape: f32[2,8,32], index: 0, kind: input, shape index: {}]   ;;  %s1174_s1 = inlined_call_operand.vmem [shape: f32[32,384], index: 1, kind: input, shape index: {}]   ;;  %s1175_s2 = inlined_call_operand.vmem [shape: f32[1,384], index: 2, kind: input, shape index: {}]   ;;  %s1176_s3 = inlined_call_operand.vmem [shape: f32[128,32], index: 3, kind: input, shape index: {}]   ;;  %s1177_s4 = inlined_call_operand.vmem [shape: f32[1,32], index: 4, kind: input, shape index: {}]   ;;  %s1178_s5 = inlined_call_operand.hbm [shape: f32[2,8,32], index: 5, kind: output, shape index: {}]  }
   0x1   :  { %12 = vsyncpa [#allocation3 + $0x1], 0  ;;  %s953_s18 = smov 0   ;;  %s955_s19 = smov 0  }
   0x2   :  { %s957_s20 = smov 0   ;;  %s959_s21 = smov 0  }
   0x3 LB: > { %s974_s22 = sadd.s32 4294967295, %s918_s21   ;;  %s717_s23 = sadd.s32 4294967294, %s918_s21   ;;  %s918_s21 = sphi %s959_s21, %s1184_s21   ;;  %s914_s20 = sphi %s957_s20, %s1183_s20   ;;  %s910_s19 = sphi %s955_s19, %s1182_s19   ;;  %s906_s18 = sphi %s953_s18, %s1181_s18  }
   0x4   : > { %s978_s24 = sadd.s32 1, %s918_s21   ;;  %s135_s25 = sadd.s32 1, %s914_s20 }
   0x5   : > { %s132_s26 = ssub.s32 %s918_s21, %s978_s24  ;;  %p145_p0 = scmp.ne.s32.totalorder %s914_s20, %s910_s19 }
   0x6   : > { %p133_p1 = scmp.eq.s32.totalorder %s132_s26, 0  ;;  %p146_p2 = scmp.eq.s32.totalorder %s974_s22, 1 }
   0x7   : > { %p151_p3 = scmp.ne.s32.totalorder %s910_s19, %s906_s18  ;;  %p152_p4 = scmp.eq.s32.totalorder %s717_s23, 1 }
   0x8   : > { %s989_s27 = scalar_select %p133_p1, %s914_s20, %s135_s25  }
   0x9   : > { %p991_p5 = por %p146_p2, %p145_p0  ;;  %p995_p6 = por %p152_p4, %p151_p3 }
   0xa   : > { %p720_p7 = scmp.ge.s32.totalorder %s918_s21, 1  ;;  %p189_p8 = scmp.lt.s32.totalorder %s918_s21, 3 }
   0xc   : > { %p190_p9 = pnand %p720_p7, %p189_p8 }
   0xd   : > { %p216_p10 = scmp.lt.s32.totalorder (!%p190_p9), %s974_s22, 1  ;;  %s728_s8 = sshll.u32 (!%p190_p9), %s974_s22, 7 }
   0xe   : > { %193 = sbr.rel (%p190_p9) target bundleno = 1134 (0x46e), region = 40  ;;  %s1137_s13 = scalar_lea.hbm (!%p190_p9), %s1178_s5, %s728_s8 }
  0x13   : > { %v231_v0 = vld [vmem:[%s1174_s1 + $0x50] sm:$0xff]  ;;  %v230_v1 = vld [vmem:[%s1174_s1 + $0x48] sm:$0xff]  ;;  %v228_v2 = vld [vmem:[%s1174_s1 + $0x38] sm:$0xff]  ;;  %v920_v4 = vmov 0.0   ;;  %s217_s15 = scalar_select %p216_p10, %s974_s22, 1  ;;  %vm250_vm0 = vcmask 261120   ;;  %v235_v14 = vlaneseq }
  0x14   : > { %278 = vmatprep.subr.mxu1 %v231_v0  ;;  %v227_v3 = vld [vmem:[%s1174_s1 + $0x30] sm:$0xff]  ;;  %318 = vmatprep.mubr.f32.mxu1 %v920_v4  ;;  %v225_v5 = vld [vmem:[%s1174_s1 + $0x20] sm:$0xff]  ;;  %v224_v6 = vld [vmem:[%s1174_s1 + $0x18] sm:$0xff]  ;;  %vm921_vm1 = vmmov 0   ;;  %vm465_vm2 = vcmask 64512   ;;  %s922_s22 = smov [#allocation2]  }
  0x15   : > { %279 = vmatpush1.msra.mxu1 %v230_v1  ;;  %778 = vmatprep.subr.mxu0 %v920_v4  ;;  %v222_v7 = vld [vmem:[%s1174_s1 + $0x8] sm:$0xff]  ;;  %s722_s26 = sshll.u32 %s217_s15, 3  ;;  %v221_v8 = vld [vmem:[%s1174_s1] sm:$0xff]  ;;  %v232_v10 = vld [vmem:[%s1174_s1 + $0x58] sm:$0xff]  ;;  %v236_v15 = vshrl.u32 %v235_v14, 7  ;;  %s862_s16 = sshll.u32 %s922_s22, 4  ;;  %s863_s16 = int_to_ptr.vmem [resolvable:$false] %s862_s16 }
  0x16   : > { %280 = vmatprep.subr.mxu1 %v228_v2  ;;  %s219_s9 = scalar_lea.vmem %s1173_s0, %s722_s26  ;;  %v229_v11 = vld [vmem:[%s1174_s1 + $0x40] sm:$0xff]  ;;  %v226_v12 = vld [vmem:[%s1174_s1 + $0x28] sm:$0xff]  ;;  %v223_v13 = vld [vmem:[%s1174_s1 + $0x10] sm:$0xff]  ;;  %810 = vmatprep.mubr.msk.f32.mxu0 %vm921_vm1, %v920_v4  ;;  %s213_s26 = sand.u32 1, %s910_s19  }
  0x17   : > { %281 = vmatpush1.msra.mxu1 %v227_v3  ;;  %v220_v9 = vld [vmem:[%s219_s9] sm:$0xff]  ;;  %v245_v16 = vsub.s32 2, %v236_v15  ;;  %v241_v19 = vsub.s32 1, %v236_v15  ;;  %v237_v20 = vsub.s32 0, %v236_v15  ;;  %v565_v38 = vld [vmem:[%s1176_s3 + $0x78] sm:$0xff]  ;;  %v564_v39 = vld [vmem:[%s1176_s3 + $0x70] sm:$0xff] }
  0x18   : > { %282 = vmatprep.subr.mxu1 %v225_v5  ;;  %v233_v17 = vld [vmem:[%s1175_s2] sm:$0x7]  ;;  %779 = vmatpush3.msra.mxu0 %v565_v38  ;;  %v563_v40 = vld [vmem:[%s1176_s3 + $0x68] sm:$0xff]  ;;  %v561_v42 = vld [vmem:[%s1176_s3 + $0x58] sm:$0xff]  ;;  %s721_s30 = sshll.u32 %s213_s26, 3  ;;  %s645_s14 = scalar_lea.sflag [#allocation3], %s213_s26 }
  0x19   : > { %283 = vmatpush1.msra.mxu1 %v224_v6  ;;  %v246_v18 = vrot.slane %v233_v17, %v245_v16  ;;  %v242_v21 = vrot.slane %v233_v17, %v241_v19  ;;  %v238_v23 = vrot.slane %v233_v17, %v237_v20  ;;  %780 = vmatprep.subr.mxu0 %v920_v4  ;;  %v562_v41 = vld [vmem:[%s1176_s3 + $0x60] sm:$0xff]  ;;  %v560_v43 = vld [vmem:[%s1176_s3 + $0x50] sm:$0xff]  ;;  %v559_v44 = vld [vmem:[%s1176_s3 + $0x48] sm:$0xff]  ;;  %s215_s9 = scalar_lea.vmem [#allocation2], %s721_s30  ;;  %s864_s17 = scalar_lea.vmem %s863_s16, 256 }
  0x1a   : > { %284 = vmatprep.subr.mxu1 %v222_v7  ;;  %781 = vmatpush3.msra.mxu0 %v564_v39  ;;  %v558_v45 = vld [vmem:[%s1176_s3 + $0x40] sm:$0xff]  ;;  %v557_v46 = vld [vmem:[%s1176_s3 + $0x38] sm:$0xff]  ;;  %v556_v47 = vld [vmem:[%s1176_s3 + $0x30] sm:$0xff]  ;;  %s658_s10 = sshll.u32 %s215_s9, 4  ;;  %s659_s10 = int_to_ptr.vmem [resolvable:$true] %s658_s10 }
  0x1b   : > { %285 = vmatpush1.msra.mxu1 %v221_v8  ;;  %782 = vmatprep.subr.mxu0 %v920_v4  ;;  %v555_v48 = vld [vmem:[%s1176_s3 + $0x28] sm:$0xff]  ;;  %v554_v49 = vld [vmem:[%s1176_s3 + $0x20] sm:$0xff]  ;;  %v553_v50 = vld [vmem:[%s1176_s3 + $0x18] sm:$0xff]  ;;  %s858_s15 = scalar_lea.vmem %s659_s10, 128  ;;  %p865_p0 = scmp.lt.s32.totalorder %s659_s10, %s863_s16 }
  0x1c   : > { %723 = vmatmul.mubr.msk.f32.vlgmr.msra.gmra.mxu1 %vm250_vm0, %v220_v9  ;;  %757 = vmatprep.subr.mxu1 %v920_v4  ;;  %v552_v51 = vld [vmem:[%s1176_s3 + $0x10] sm:$0xff]  ;;  %v551_v52 = vld [vmem:[%s1176_s3 + $0x8] sm:$0xff]  ;;  %v550_v56 = vld [vmem:[%s1176_s3] sm:$0xff]  ;;  %p859_p11 = scmp.ne.s32.totalorder %s659_s10, %s858_s15  ;;  %p866_p1 = scmp.lt.s32.totalorder %s864_s17, %s858_s15 }
  0x1d   : > { %758 = vmatpush3.msra.mxu1 %v232_v10  ;;  %765 = vmatprep.mubr.msk.f32.mxu1 %vm921_vm1, %v920_v4  ;;  %v726_v59 = vld [vmem:[%s1177_s4] ss:$0 sm:$0xff] }
  0x1e   : > { %759 = vmatprep.subr.mxu1 %v920_v4  ;;  %783 = vmatpush3.msra.mxu0 %v563_v40  ;;  %p860_p12 = pnand %p859_p11, %p991_p5  ;;  %p867_p2 = por %p866_p1, %p865_p0 }
  0x1f   : > { %760 = vmatpush3.msra.mxu1 %v229_v11  ;;  %784 = vmatprep.subr.mxu0 %v920_v4 }
  0x20   : > { %761 = vmatprep.subr.mxu1 %v920_v4  ;;  %785 = vmatpush3.msra.mxu0 %v562_v41  ;;  %p861_p13 = pneg %p860_p12 }
  0x21   : > { %762 = vmatpush3.msra.mxu1 %v226_v12  ;;  %786 = vmatprep.subr.mxu0 %v920_v4 }
  0x22   : > { %763 = vmatprep.subr.mxu1 %v920_v4  ;;  %787 = vmatpush3.msra.mxu0 %v561_v42  ;;  %p868_p3 = pnand %p867_p2, %p861_p13 }
  0x23   : > { %764 = vmatpush3.msra.mxu1 %v223_v13  ;;  %788 = vmatprep.subr.mxu0 %v920_v4 }
  0x24   : > { %766 = vmatmul.mubr.msk.f32.vlgmr.msra.gmra.mxu1 %vm250_vm0, %v220_v9  ;;  %768 = vmatprep.subr.mxu1 %v920_v4 }
  0x25   : > { %770 = vmatprep.mubr.msk.f32.mxu1 %vm921_vm1, %v920_v4  ;;  %789 = vmatpush3.msra.mxu0 %v560_v43 }
  0x26   : > { %790 = vmatprep.subr.mxu0 %v920_v4 }
  0x27   : > { %791 = vmatpush3.msra.mxu0 %v559_v44 }
  0x28   : > { %792 = vmatprep.subr.mxu0 %v920_v4 }
  0x29   : > { %793 = vmatpush3.msra.mxu0 %v558_v45 }
  0x2a   : > { %794 = vmatprep.subr.mxu0 %v920_v4 }
  0x2b   : > { %795 = vmatpush3.msra.mxu0 %v557_v46 }
  0x2c   : > { %796 = vmatprep.subr.mxu0 %v920_v4 }
  0x2d   : > { %797 = vmatpush3.msra.mxu0 %v556_v47 }
  0x2e   : > { %798 = vmatprep.subr.mxu0 %v920_v4 }
  0x2f   : > { %799 = vmatpush3.msra.mxu0 %v555_v48 }
  0x30   : > { %800 = vmatprep.subr.mxu0 %v920_v4 }
  0x31   : > { %801 = vmatpush3.msra.mxu0 %v554_v49 }
  0x32   : > { %802 = vmatprep.subr.mxu0 %v920_v4 }
  0x33   : > { %803 = vmatpush3.msra.mxu0 %v553_v50 }
  0x34   : > { %804 = vmatprep.subr.mxu0 %v920_v4 }
  0x35   : > { %805 = vmatpush3.msra.mxu0 %v552_v51 }
  0x36   : > { %806 = vmatprep.subr.mxu0 %v920_v4 }
  0x37   : > { %807 = vmatpush3.msra.mxu0 %v551_v52 }
  0x38   : > { %808 = vmatprep.subr.mxu0 %v920_v4 }
  0x39   : > { %809 = vmatpush3.msra.mxu0 %v550_v56 }
  0xdc   : > { %v320_v22 = vpop.f32.mrf.mxu1 }
  0xdd   : > { %v321_v26 = vadd.f32 %v320_v22, %v238_v23 }
  0xde   : > { %v322_v24 = vpop.f32.mrf.mxu1 }
  0xdf   : > { %v323_v25 = vadd.f32 %v322_v24, %v242_v21 }
  0xe1   : > { %769 = vmatpush3.xpose.msra.mxu1 %v323_v25 }
  0xe2   : > { %773 = vmatprep.subr.mxu1 %v920_v4 }
  0xe4   : > { %771 = vmatmul.mubr.f32.vlgmr.msra.gmra.mxu1 %v321_v26  ;;  %v391_v27 = vpop.f32.mrf.mxu1 }
  0xe5   : > { %775 = vmatprep.mubr.msk.f32.mxu1 %vm921_vm1, %v920_v4  ;;  %v392_v28 = vadd.f32 %v391_v27, %v246_v18 }
  0xe6   : > { %v767_v29 = vpop.f32.mrf.mxu1 }
  0xe7   : > { %774 = vmatpush3.msra.mxu1 %v392_v28 }
 0x1a4   : > { %v461_v30 = vpop.f32.mrf.mxu1 }
 0x1a5   : > { %v466_v31 = vsel %vm465_vm2, %v461_v30, -inf }
 0x1a6   : > { %467 = vmax.xlane.f32.xlu0 %v466_v31  ;;  %v772_v32 = vpop.f32.mrf.mxu1 }
 0x22f   : > { %v468_v33 = vpop.xlane.xlu0 %467 }
 0x230   : > { %v469_v34 = vsub.f32 %v461_v30, %v468_v33 }
 0x232   : > { %v470_v35 = vmul.f32 1.442695, %v469_v34 }
 0x234   : > { %854 = vpow2.f32 %v470_v35 }
 0x241   : > { %v855_v36 = vpop.eup %854 }
 0x242   : > { %v472_v37 = vsel %vm465_vm2, %v855_v36, 0.0 }
 0x243   : > { %473 = vadd.xlane.f32.xlu0 %v472_v37 }
 0x2cc   : > { %v474_v53 = vpop.xlane.xlu0 %473 }
 0x2cd   : > { %856 = vrcp.f32 %v474_v53 }
 0x2da   : > { %v857_v54 = vpop.eup %856 }
 0x2db   : > { %v476_v55 = vmul.f32 %v857_v54, %v855_v36 }
 0x2dd   : > { %776 = vmatmul.mubr.msk.f32.vlgmr.msra.gmra.mxu1 %vm465_vm2, %v476_v55 }
 0x39d   : > { %v546_v57 = vpop.f32.mrf.mxu1 }
 0x39e   : > { %811 = vmatmul.mubr.f32.vlgmr.msra.gmra.mxu0 %v546_v57 }
 0x39f   : > { %v777_v58 = vpop.f32.mrf.mxu1 }
 0x45e   : > { %v639_v60 = vpop.f32.mrf.mxu0 }
 0x45f   : > { %v640_v61 = vadd.f32 %v726_v59, %v639_v60 }
 0x460   : > { %v812_v62 = vpop.f32.mrf.mxu0 }
 0x461   : > { %643 = vst.msk [vmem:[%s215_s9] sm:$0xff] %vm250_vm0, %v640_v61 }
 0x462   : > { %871 = shalt.err (!%p868_p3)
}
 0x463   : > { %s872_s23 = scalar_lea.hbm %s1137_s13, 128  ;;  %s876_s30 = scalar_lea.hbm %s1178_s5, 256 }
 0x464   : > { %p873_p4 = scmp.ne.s32.totalorder %s1137_s13, %s872_s23  ;;  %p877_p9 = scmp.lt.s32.totalorder %s1137_s13, %s1178_s5 }
 0x465   : > { %p878_p10 = scmp.lt.s32.totalorder %s876_s30, %s872_s23 }
 0x466   : > { %p874_p7 = pnand %p873_p4, %p991_p5 }
 0x467   : > { %p879_p11 = por %p878_p10, %p877_p9 }
 0x468   : > { %p875_p8 = pneg %p874_p7 }
 0x46a   : > { %p880_p12 = pnand %p879_p11, %p875_p8 }
 0x46c   : > { %883 = shalt.err (!%p880_p12)
}
 0x46d   : > { %813 = dma.vmem_to_hbm [thread:$0]  (%p991_p5), %s659_s10, 128, %s1137_s13, %s645_s14  }
 0x46e PF: > { %p819_p13 = scmp.ge.s32.totalorder %s918_s21, 2  ;;  %s670_s8 = sand.u32 1, %s906_s18  }
 0x46f   : > { %s671_s9 = scalar_lea.sflag [#allocation3], %s670_s8 }
 0x470   : > { %p816_p0 = pnand %p819_p13, %p995_p6 }
 0x472   : > { %p817_p1 = pneg %p816_p0 }
 0x474   : > { %901 = dma.done.wait (%p817_p1), %s671_s9, 128  }
 0x475   : > { %903 = vsyncadd (%p817_p1), %s671_s9, 4294967168  ;;  %p15_p2 = scmp.ge.s32.totalorder %s978_s24, 4   ;;  %s1181_s18 = smov %s910_s19 }
 0x476   : > { %s1182_s19 = smov %s914_s20  ;;  %s1183_s20 = smov %s989_s27 }
 0x477   : > { %s1184_s21 = smov %s978_s24  ;;  %17 = sbr.rel (!%p15_p2) target bundleno = 3 (0x3), region = 75 }
 0x47c   :  { %676 = vsyncpa [#allocation3], 1 }
 0x47d   :  { %678 = vsyncpa [#allocation3 + $0x1], 1 }

</bundles_post_ra>
